<compile_context>
chip_gen: v7x
topology: tpu7x:2x2x1
jax: 0.10.0
libtpu: 0.0.40
codegen_flags: <defaults>
</compile_context>

<pallas_src>
import functools

import numpy as np
import jax
import jax.numpy as jnp
from jax.experimental import pallas as pl
from jax.experimental.pallas import tpu as pltpu

_EPS = 1e-5
_NEG = float(-jnp.finfo(jnp.float32).max)
_VMEM_LIMIT = 64 * 1024 * 1024


def _layernorm(v, g, b):
    mu = jnp.mean(v, axis=-1, keepdims=True)
    var = jnp.mean((v - mu) ** 2, axis=-1, keepdims=True)
    return (v - mu) * jax.lax.rsqrt(var + _EPS) * g + b


def _pick_tile(n, target=128):
    """Largest clean tile: `target` if it divides n, else the full extent."""
    return target if n % target == 0 else n


# --------------------------------------------------------------------------- #
# Kernel A: PreNorm + fused QKV projection, head-major cache layout
# --------------------------------------------------------------------------- #
def _qkv_kernel(H, D, x_ref, ln1_g, ln1_b, wq, wk, wv, q_out, kv_out):
    """x_ref: (1, tm, C) f32; weights bf16.

    q_out: (1, H, tm, D)  (q pre-scaled by D**-0.5)
    kv_out: (2, 1, H, tm, D)  -- the layer's kv cache, written in final layout.
    """
    xn = _layernorm(x_ref[0], ln1_g[...], ln1_b[...]).astype(jnp.bfloat16)
    scale = D ** -0.5
    q = jnp.dot(xn, wq[...], preferred_element_type=jnp.float32) * scale
    k = jnp.dot(xn, wk[...], preferred_element_type=jnp.float32)
    v = jnp.dot(xn, wv[...], preferred_element_type=jnp.float32)
    # Channel-major (tm, H*D) -> head-major (H, tm, D); done once per row tile.
    for h in range(H):
        sl = slice(h * D, (h + 1) * D)
        q_out[0, h] = q[:, sl]
        kv_out[0, 0, h] = k[:, sl]
        kv_out[1, 0, h] = v[:, sl]


# --------------------------------------------------------------------------- #
# Kernel B: flash attention + out-proj + residual + PreNorm GLU FF + residual
# --------------------------------------------------------------------------- #
def _attn_ff_kernel(H, D, C, FF,
                    x_ref, q_ref, kv_ref, pos_ref, mask_ref,
                    wo, ln2_g, ln2_b, w1, b1, w2, b2,
                    x_out, m_sc, l_sc, acc_sc):
    """Grid: (batch, q-tiles, k-tiles); k axis is the (arbitrary) reduction."""
    ki = pl.program_id(2)

    @pl.when(ki == 0)
    def _():
        m_sc[...] = jnp.full(m_sc.shape, -jnp.inf, m_sc.dtype)
        l_sc[...] = jnp.zeros(l_sc.shape, l_sc.dtype)
        acc_sc[...] = jnp.zeros(acc_sc.shape, acc_sc.dtype)

    q = q_ref[0].astype(jnp.bfloat16)        # (H, tq, D), already scaled
    k = kv_ref[0, 0].astype(jnp.bfloat16)    # (H, tk, D)
    v = kv_ref[1, 0].astype(jnp.bfloat16)    # (H, tk, D)

    # Batched over heads: one MXU pass instead of a per-head python loop.
    s = jnp.einsum('hqd,hkd->hqk', q, k, preferred_element_type=jnp.float32)
    mask_add = jnp.where(mask_ref[0] != 0, _NEG, 0.0)            # (tq, tk) once
    s = s + pos_ref[...] + mask_add[None, :, :]

    # Online softmax update.
    m_prev = m_sc[...]
    m_new = jnp.maximum(m_prev, jnp.max(s, axis=-1, keepdims=True))
    alpha = jnp.exp(m_prev - m_new)
    p = jnp.exp(s - m_new)
    l_sc[...] = alpha * l_sc[...] + jnp.sum(p, axis=-1, keepdims=True)
    acc_sc[...] = alpha * acc_sc[...] + jnp.einsum(
        'hqk,hkd->hqd', p.astype(jnp.bfloat16), v,
        preferred_element_type=jnp.float32)
    m_sc[...] = m_new

    @pl.when(ki == pl.num_programs(2) - 1)
    def _():
        # Normalize via the EUP reciprocal (keeps the VALU slot free).
        o = acc_sc[...] * pl.reciprocal(l_sc[...], approx=True)   # (H, tq, D)
        # Head-major -> channel-major, fed straight into Wo (no VMEM scratch
        # round trip).
        o_cat = jnp.concatenate([o[h] for h in range(H)], axis=-1)  # (tq, H*D)
        attn_out = jnp.dot(o_cat.astype(jnp.bfloat16), wo[...],
                           preferred_element_type=jnp.float32)      # (tq, C)
        x1 = x_ref[0] + attn_out                                    # residual

        # PreNorm + GLU feed-forward.
        # TODO(synk): nn.Dropout inside ff() treated as identity (eval mode).
        xn2 = _layernorm(x1, ln2_g[...], ln2_b[...]).astype(jnp.bfloat16)
        pg = jnp.dot(xn2, w1[...], preferred_element_type=jnp.float32) + b1[...]
        a = pg[:, :FF]
        g = pg[:, FF:]
        glu = a * (g * jax.nn.sigmoid(g))                           # a * SiLU(g)
        y = jnp.dot(glu.astype(jnp.bfloat16), w2[...],
                    preferred_element_type=jnp.float32) + b2[...]
        x_out[0] = x1 + y                                           # residual


# --------------------------------------------------------------------------- #
# Wrappers
# --------------------------------------------------------------------------- #
def attention_ff_layer(x, attn_mask, pos_bias, params, H, D):
    B, N, C = x.shape
    HD = H * D
    FF = params['w2'].shape[0]
    f32, bf16 = jnp.float32, jnp.bfloat16

    tm = _pick_tile(N)
    tq = _pick_tile(N)
    tk = _pick_tile(N)

    # bf16 weights: 2x MXU throughput, half the weight DMA bytes / VMEM.
    wq = params['wq'].astype(bf16)
    wk = params['wk'].astype(bf16)
    wv = params['wv'].astype(bf16)
    wo = params['wo'].astype(bf16)
    w1 = params['w1'].astype(bf16)
    w2 = params['w2'].astype(bf16)

    def const(shape):
        # Block index constant across the grid (weights / norm params): fetched
        # once, never re-DMA'd.
        # TODO(synk): single-buffer these via pipeline_mode=pl.Buffered(1) when
        # that path is enabled everywhere, to halve their resident VMEM.
        return pl.BlockSpec(shape, lambda *_: (0,) * len(shape))

    # ---- kernel A: LayerNorm + QKV projection ----
    q_hm, kv = pl.pallas_call(
        functools.partial(_qkv_kernel, H, D),
        grid=(B, N // tm),
        in_specs=[
            pl.BlockSpec((1, tm, C), lambda b, m: (b, m, 0)),
            const((1, C)), const((1, C)),
            const((C, HD)), const((C, HD)), const((C, HD)),
        ],
        out_specs=[
            pl.BlockSpec((1, H, tm, D), lambda b, m: (b, 0, m, 0)),
            pl.BlockSpec((2, 1, H, tm, D), lambda b, m: (0, b, 0, m, 0)),
        ],
        out_shape=[
            jax.ShapeDtypeStruct((B, H, N, D), f32),
            jax.ShapeDtypeStruct((2, B, H, N, D), f32),
        ],
        compiler_params=pltpu.CompilerParams(
            dimension_semantics=("parallel", "parallel"),
            vmem_limit_bytes=_VMEM_LIMIT),
    )(x, params['ln1_g'], params['ln1_b'], wq, wk, wv)

    # ---- kernel B: flash attention + output proj + GLU FF ----
    x_out = pl.pallas_call(
        functools.partial(_attn_ff_kernel, H, D, C, FF),
        grid=(B, N // tq, N // tk),
        in_specs=[
            pl.BlockSpec((1, tq, C), lambda b, qi, ki: (b, qi, 0)),          # x
            pl.BlockSpec((1, H, tq, D), lambda b, qi, ki: (b, 0, qi, 0)),    # q
            pl.BlockSpec((2, 1, H, tk, D),
                         lambda b, qi, ki: (0, b, 0, ki, 0)),                # k/v stream
            pl.BlockSpec((H, tq, tk), lambda b, qi, ki: (0, qi, ki)),        # pos_bias
            pl.BlockSpec((1, tq, tk), lambda b, qi, ki: (b, qi, ki)),        # mask
            const((HD, C)),
            const((1, C)), const((1, C)),
            const((C, 2 * FF)), const((1, 2 * FF)),
            const((FF, C)), const((1, C)),
        ],
        out_specs=pl.BlockSpec((1, tq, C), lambda b, qi, ki: (b, qi, 0)),
        out_shape=jax.ShapeDtypeStruct((B, N, C), f32),
        scratch_shapes=[
            pltpu.VMEM((H, tq, 1), f32),   # running max
            pltpu.VMEM((H, tq, 1), f32),   # running sum
            pltpu.VMEM((H, tq, D), f32),   # output accumulator
        ],
        compiler_params=pltpu.CompilerParams(
            dimension_semantics=("parallel", "parallel", "arbitrary"),
            vmem_limit_bytes=_VMEM_LIMIT),
    )(x, q_hm, kv, pos_bias, attn_mask,
      wo, params['ln2_g'], params['ln2_b'], w1, params['b1'], w2, params['b2'])

    return x_out, kv


def attention_ff_stack(x, pos_bias, attn_mask, params_list, H, D):
    """Mirrors AttentionFFstack.forward (cache=None path)."""
    cached_kvs = []
    for params in params_list:
        x, kv = attention_ff_layer(x, attn_mask, pos_bias, params, H, D)
        cached_kvs.append(kv[None])          # (1, 2, B, H, N, D) == kv[None]
    return x, cached_kvs


def init_layer_params(key, C, H, D, mult):
    HD = H * D
    FF = C * mult
    ks = jax.random.split(key, 8)
    s_in = lambda fan: 1.0 / jnp.sqrt(fan)
    return {
        'ln1_g': jnp.ones((1, C), jnp.float32),
        'ln1_b': jnp.zeros((1, C), jnp.float32),
        'wq': s_in(C) * jax.random.normal(ks[0], (C, HD), jnp.float32),
        'wk': s_in(C) * jax.random.normal(ks[1], (C, HD), jnp.float32),
        'wv': s_in(C) * jax.random.normal(ks[2], (C, HD), jnp.float32),
        'wo': s_in(HD) * jax.random.normal(ks[3], (HD, C), jnp.float32),
        'ln2_g': jnp.ones((1, C), jnp.float32),
        'ln2_b': jnp.zeros((1, C), jnp.float32),
        'w1': s_in(C) * jax.random.normal(ks[4], (C, 2 * FF), jnp.float32),
        'b1': 0.01 * jax.random.normal(ks[5], (1, 2 * FF), jnp.float32),
        'w2': s_in(FF) * jax.random.normal(ks[6], (FF, C), jnp.float32),
        'b2': 0.01 * jax.random.normal(ks[7], (1, C), jnp.float32),
    }


def _reference_stack(x, pos_bias, attn_mask, params_list, H, D):
    """Pure-JAX f32 reference mirroring the PyTorch forward."""
    B, N, C = x.shape

    def ln(v, g, b):
        mu = v.mean(-1, keepdims=True)
        var = ((v - mu) ** 2).mean(-1, keepdims=True)
        return (v - mu) / jnp.sqrt(var + _EPS) * g + b

    kvs = []
    for p in params_list:
        FF = p['w2'].shape[0]
        xn = ln(x, p['ln1_g'], p['ln1_b'])
        q = (xn @ p['wq']).reshape(B, N, H, D).transpose(0, 2, 1, 3)
        k = (xn @ p['wk']).reshape(B, N, H, D).transpose(0, 2, 1, 3)
        v = (xn @ p['wv']).reshape(B, N, H, D).transpose(0, 2, 1, 3)
        dots = jnp.einsum('bhqd,bhkd->bhqk', q, k) * D ** -0.5
        dots = dots + pos_bias[None]
        dots = jnp.where(attn_mask[:, None] != 0, _NEG, dots)
        attn = jax.nn.softmax(dots, axis=-1)
        o = jnp.einsum('bhqk,bhkd->bhqd', attn, v)
        o = o.transpose(0, 2, 1, 3).reshape(B, N, H * D)
        x1 = x + o @ p['wo']
        xn2 = ln(x1, p['ln2_g'], p['ln2_b'])
        pg = xn2 @ p['w1'] + p['b1']
        a, g = pg[..., :FF], pg[..., FF:]
        x = x1 + (a * (g * jax.nn.sigmoid(g))) @ p['w2'] + p['b2']
        kvs.append(jnp.stack([k, v], axis=0)[None])
    return x, kvs


if __name__ == "__main__":
    B, N, C = 2, 8, 32           # batch, seq, dim
    H, D = 4, 8                  # n_heads, head_dim
    depth, mult = 2, 4           # total_depth, ff_mult

    key = jax.random.PRNGKey(0)
    kx, kp, *kls = jax.random.split(key, 2 + depth)

    x = jax.random.normal(kx, (B, N, C), jnp.float32)
    pos_bias = 0.02 * jax.random.normal(kp, (H, N, N), jnp.float32)
    causal = jnp.triu(jnp.ones((N, N), jnp.int32), k=1)   # 1 above diag = masked
    attn_mask = jnp.broadcast_to(causal, (B, N, N))

    params_list = [init_layer_params(kl, C, H, D, mult) for kl in kls]

    out, cached_kvs = attention_ff_stack(x, pos_bias, attn_mask, params_list, H, D)
    out = jax.block_until_ready(out)
    cached_kvs = [jax.block_until_ready(kv) for kv in cached_kvs]

    assert out.shape == (B, N, C)
    assert cached_kvs[0].shape == (1, 2, B, H, N, D)

    # Correctness check vs. pure-JAX f32 reference (kernel uses bf16 matmuls,
    # hence the loose tolerance).
    out_ref, kvs_ref = _reference_stack(x, pos_bias, attn_mask, params_list, H, D)
    np.testing.assert_allclose(np.asarray(out), np.asarray(out_ref),
                               rtol=0.1, atol=0.15)
    for kv, kv_ref in zip(cached_kvs, kvs_ref):
        np.testing.assert_allclose(np.asarray(kv), np.asarray(kv_ref),
                                   rtol=0.1, atol=0.15)

    print("KERNEL_OK")
</pallas_src>

<mosaic_0001>
module attributes {stable_mosaic.version = 11 : i64} {
  func.func @_qkv_kernel(%arg0: i32, %arg1: i32, %arg2: memref<1x8x32xf32, #tpu.memory_space<vmem>>, %arg3: memref<1x32xf32, #tpu.memory_space<vmem>>, %arg4: memref<1x32xf32, #tpu.memory_space<vmem>>, %arg5: memref<32x32xbf16, #tpu.memory_space<vmem>>, %arg6: memref<32x32xbf16, #tpu.memory_space<vmem>>, %arg7: memref<32x32xbf16, #tpu.memory_space<vmem>>, %arg8: memref<1x4x8x8xf32, #tpu.memory_space<vmem>>, %arg9: memref<2x1x4x8x8xf32, #tpu.memory_space<vmem>>) attributes {dimension_semantics = [#tpu.dimension_semantics<parallel>, #tpu.dimension_semantics<parallel>], iteration_bounds = array<i64: 2, 1>, scalar_prefetch = 0 : i64, scratch_operands = 0 : i64, tpu.core_type = #tpu.core_type<tc>, window_params = [{transform_indices = @transform_0, window_bounds = array<i64: 1, 8, 32>}, {pipeline_mode = #tpu.pipeline_mode<synchronous>, transform_indices = @transform_1, window_bounds = array<i64: 1, 32>}, {pipeline_mode = #tpu.pipeline_mode<synchronous>, transform_indices = @transform_2, window_bounds = array<i64: 1, 32>}, {pipeline_mode = #tpu.pipeline_mode<synchronous>, transform_indices = @transform_3, window_bounds = array<i64: 32, 32>}, {pipeline_mode = #tpu.pipeline_mode<synchronous>, transform_indices = @transform_4, window_bounds = array<i64: 32, 32>}, {pipeline_mode = #tpu.pipeline_mode<synchronous>, transform_indices = @transform_5, window_bounds = array<i64: 32, 32>}, {transform_indices = @transform_6, window_bounds = array<i64: 1, 4, 8, 8>}, {transform_indices = @transform_7, window_bounds = array<i64: 2, 1, 4, 8, 8>}]} {
    %c0 = arith.constant 0 : index
    %c0_0 = arith.constant 0 : index
    %c0_1 = arith.constant 0 : index
    %0 = vector.load %arg2[%c0, %c0_0, %c0_1] : memref<1x8x32xf32, #tpu.memory_space<vmem>>, vector<1x8x32xf32>
    %1 = vector.shape_cast %0 : vector<1x8x32xf32> to vector<8x32xf32>
    %c0_2 = arith.constant 0 : index
    %c0_3 = arith.constant 0 : index
    %2 = vector.load %arg3[%c0_2, %c0_3] : memref<1x32xf32, #tpu.memory_space<vmem>>, vector<1x32xf32>
    %c0_4 = arith.constant 0 : index
    %c0_5 = arith.constant 0 : index
    %3 = vector.load %arg4[%c0_4, %c0_5] : memref<1x32xf32, #tpu.memory_space<vmem>>, vector<1x32xf32>
    %cst = arith.constant dense<0.000000e+00> : vector<8xf32>
    %4 = vector.multi_reduction <add>, %1, %cst [1] : vector<8x32xf32> to vector<8xf32>
    %5 = vector.shape_cast %4 : vector<8xf32> to vector<8x1xf32>
    %cst_6 = arith.constant 3.200000e+01 : f32
    %6 = vector.broadcast %cst_6 : f32 to vector<8x1xf32>
    %7 = arith.divf %5, %6 : vector<8x1xf32>
    %8 = vector.broadcast %7 : vector<8x1xf32> to vector<8x32xf32>
    %9 = arith.subf %1, %8 : vector<8x32xf32>
    %10 = arith.mulf %9, %9 : vector<8x32xf32>
    %cst_7 = arith.constant dense<0.000000e+00> : vector<8xf32>
    %11 = vector.multi_reduction <add>, %10, %cst_7 [1] : vector<8x32xf32> to vector<8xf32>
    %12 = vector.shape_cast %11 : vector<8xf32> to vector<8x1xf32>
    %cst_8 = arith.constant 3.200000e+01 : f32
    %13 = vector.broadcast %cst_8 : f32 to vector<8x1xf32>
    %14 = arith.divf %12, %13 : vector<8x1xf32>
    %15 = vector.broadcast %7 : vector<8x1xf32> to vector<8x32xf32>
    %16 = arith.subf %1, %15 : vector<8x32xf32>
    %cst_9 = arith.constant 9.99999974E-6 : f32
    %17 = vector.broadcast %cst_9 : f32 to vector<8x1xf32>
    %18 = arith.addf %14, %17 : vector<8x1xf32>
    %19 = math.rsqrt %18 : vector<8x1xf32>
    %20 = vector.broadcast %19 : vector<8x1xf32> to vector<8x32xf32>
    %21 = arith.mulf %16, %20 : vector<8x32xf32>
    %22 = vector.broadcast %2 : vector<1x32xf32> to vector<8x32xf32>
    %23 = arith.mulf %21, %22 : vector<8x32xf32>
    %24 = vector.broadcast %3 : vector<1x32xf32> to vector<8x32xf32>
    %25 = arith.addf %23, %24 : vector<8x32xf32>
    %26 = arith.truncf %25 : vector<8x32xf32> to vector<8x32xbf16>
    %c0_10 = arith.constant 0 : index
    %c0_11 = arith.constant 0 : index
    %27 = vector.load %arg5[%c0_10, %c0_11] : memref<32x32xbf16, #tpu.memory_space<vmem>>, vector<32x32xbf16>
    %cst_12 = arith.constant dense<0.000000e+00> : vector<8x32xf32>
    %28 = tpu.matmul %26, %27, %cst_12 {dimension_numbers = #tpu.dot_dimension_numbers<[1], [0], [0], [1], [0, 0, 1, 1], [], []>} : vector<8x32xbf16>, vector<32x32xbf16>, vector<8x32xf32> -> vector<8x32xf32>
    %cst_13 = arith.constant 0.353553385 : f32
    %29 = vector.broadcast %cst_13 : f32 to vector<8x32xf32>
    %30 = arith.mulf %28, %29 : vector<8x32xf32>
    %c0_14 = arith.constant 0 : index
    %c0_15 = arith.constant 0 : index
    %31 = vector.load %arg6[%c0_14, %c0_15] : memref<32x32xbf16, #tpu.memory_space<vmem>>, vector<32x32xbf16>
    %cst_16 = arith.constant dense<0.000000e+00> : vector<8x32xf32>
    %32 = tpu.matmul %26, %31, %cst_16 {dimension_numbers = #tpu.dot_dimension_numbers<[1], [0], [0], [1], [0, 0, 1, 1], [], []>} : vector<8x32xbf16>, vector<32x32xbf16>, vector<8x32xf32> -> vector<8x32xf32>
    %c0_17 = arith.constant 0 : index
    %c0_18 = arith.constant 0 : index
    %33 = vector.load %arg7[%c0_17, %c0_18] : memref<32x32xbf16, #tpu.memory_space<vmem>>, vector<32x32xbf16>
    %cst_19 = arith.constant dense<0.000000e+00> : vector<8x32xf32>
    %34 = tpu.matmul %26, %33, %cst_19 {dimension_numbers = #tpu.dot_dimension_numbers<[1], [0], [0], [1], [0, 0, 1, 1], [], []>} : vector<8x32xbf16>, vector<32x32xbf16>, vector<8x32xf32> -> vector<8x32xf32>
    %35 = vector.extract_strided_slice %30 {offsets = [0, 0], sizes = [8, 8], strides = [1, 1]} : vector<8x32xf32> to vector<8x8xf32>
    %c0_20 = arith.constant 0 : index
    %c0_21 = arith.constant 0 : index
    %c0_22 = arith.constant 0 : index
    %c0_23 = arith.constant 0 : index
    %36 = vector.load %arg8[%c0_20, %c0_21, %c0_22, %c0_23] : memref<1x4x8x8xf32, #tpu.memory_space<vmem>>, vector<1x1x8x8xf32>
    %37 = vector.shape_cast %36 : vector<1x1x8x8xf32> to vector<8x8xf32>
    %38 = vector.shape_cast %35 : vector<8x8xf32> to vector<1x1x8x8xf32>
    tpu.vector_store %arg8[%c0_20, %c0_21, %c0_22, %c0_23], %38 {strides = array<i32>} : memref<1x4x8x8xf32, #tpu.memory_space<vmem>>, vector<1x1x8x8xf32>,
    %39 = vector.extract_strided_slice %32 {offsets = [0, 0], sizes = [8, 8], strides = [1, 1]} : vector<8x32xf32> to vector<8x8xf32>
    %c0_24 = arith.constant 0 : index
    %c0_25 = arith.constant 0 : index
    %c0_26 = arith.constant 0 : index
    %c0_27 = arith.constant 0 : index
    %c0_28 = arith.constant 0 : index
    %40 = vector.load %arg9[%c0_24, %c0_25, %c0_26, %c0_27, %c0_28] : memref<2x1x4x8x8xf32, #tpu.memory_space<vmem>>, vector<1x1x1x8x8xf32>
    %41 = vector.shape_cast %40 : vector<1x1x1x8x8xf32> to vector<8x8xf32>
    %42 = vector.shape_cast %39 : vector<8x8xf32> to vector<1x1x1x8x8xf32>
    tpu.vector_store %arg9[%c0_24, %c0_25, %c0_26, %c0_27, %c0_28], %42 {strides = array<i32>} : memref<2x1x4x8x8xf32, #tpu.memory_space<vmem>>, vector<1x1x1x8x8xf32>,
    %43 = vector.extract_strided_slice %34 {offsets = [0, 0], sizes = [8, 8], strides = [1, 1]} : vector<8x32xf32> to vector<8x8xf32>
    %c1 = arith.constant 1 : index
    %c0_29 = arith.constant 0 : index
    %c0_30 = arith.constant 0 : index
    %c0_31 = arith.constant 0 : index
    %c0_32 = arith.constant 0 : index
    %44 = vector.load %arg9[%c1, %c0_29, %c0_30, %c0_31, %c0_32] : memref<2x1x4x8x8xf32, #tpu.memory_space<vmem>>, vector<1x1x1x8x8xf32>
    %45 = vector.shape_cast %44 : vector<1x1x1x8x8xf32> to vector<8x8xf32>
    %46 = vector.shape_cast %43 : vector<8x8xf32> to vector<1x1x1x8x8xf32>
    tpu.vector_store %arg9[%c1, %c0_29, %c0_30, %c0_31, %c0_32], %46 {strides = array<i32>} : memref<2x1x4x8x8xf32, #tpu.memory_space<vmem>>, vector<1x1x1x8x8xf32>,
    %47 = vector.extract_strided_slice %30 {offsets = [0, 8], sizes = [8, 8], strides = [1, 1]} : vector<8x32xf32> to vector<8x8xf32>
    %c0_33 = arith.constant 0 : index
    %c1_34 = arith.constant 1 : index
    %c0_35 = arith.constant 0 : index
    %c0_36 = arith.constant 0 : index
    %48 = vector.load %arg8[%c0_33, %c1_34, %c0_35, %c0_36] : memref<1x4x8x8xf32, #tpu.memory_space<vmem>>, vector<1x1x8x8xf32>
    %49 = vector.shape_cast %48 : vector<1x1x8x8xf32> to vector<8x8xf32>
    %50 = vector.shape_cast %47 : vector<8x8xf32> to vector<1x1x8x8xf32>
    tpu.vector_store %arg8[%c0_33, %c1_34, %c0_35, %c0_36], %50 {strides = array<i32>} : memref<1x4x8x8xf32, #tpu.memory_space<vmem>>, vector<1x1x8x8xf32>,
    %51 = vector.extract_strided_slice %32 {offsets = [0, 8], sizes = [8, 8], strides = [1, 1]} : vector<8x32xf32> to vector<8x8xf32>
    %c0_37 = arith.constant 0 : index
    %c0_38 = arith.constant 0 : index
    %c1_39 = arith.constant 1 : index
    %c0_40 = arith.constant 0 : index
    %c0_41 = arith.constant 0 : index
    %52 = vector.load %arg9[%c0_37, %c0_38, %c1_39, %c0_40, %c0_41] : memref<2x1x4x8x8xf32, #tpu.memory_space<vmem>>, vector<1x1x1x8x8xf32>
    %53 = vector.shape_cast %52 : vector<1x1x1x8x8xf32> to vector<8x8xf32>
    %54 = vector.shape_cast %51 : vector<8x8xf32> to vector<1x1x1x8x8xf32>
    tpu.vector_store %arg9[%c0_37, %c0_38, %c1_39, %c0_40, %c0_41], %54 {strides = array<i32>} : memref<2x1x4x8x8xf32, #tpu.memory_space<vmem>>, vector<1x1x1x8x8xf32>,
    %55 = vector.extract_strided_slice %34 {offsets = [0, 8], sizes = [8, 8], strides = [1, 1]} : vector<8x32xf32> to vector<8x8xf32>
    %c1_42 = arith.constant 1 : index
    %c0_43 = arith.constant 0 : index
    %c1_44 = arith.constant 1 : index
    %c0_45 = arith.constant 0 : index
    %c0_46 = arith.constant 0 : index
    %56 = vector.load %arg9[%c1_42, %c0_43, %c1_44, %c0_45, %c0_46] : memref<2x1x4x8x8xf32, #tpu.memory_space<vmem>>, vector<1x1x1x8x8xf32>
    %57 = vector.shape_cast %56 : vector<1x1x1x8x8xf32> to vector<8x8xf32>
    %58 = vector.shape_cast %55 : vector<8x8xf32> to vector<1x1x1x8x8xf32>
    tpu.vector_store %arg9[%c1_42, %c0_43, %c1_44, %c0_45, %c0_46], %58 {strides = array<i32>} : memref<2x1x4x8x8xf32, #tpu.memory_space<vmem>>, vector<1x1x1x8x8xf32>,
    %59 = vector.extract_strided_slice %30 {offsets = [0, 16], sizes = [8, 8], strides = [1, 1]} : vector<8x32xf32> to vector<8x8xf32>
    %c0_47 = arith.constant 0 : index
    %c2 = arith.constant 2 : index
    %c0_48 = arith.constant 0 : index
    %c0_49 = arith.constant 0 : index
    %60 = vector.load %arg8[%c0_47, %c2, %c0_48, %c0_49] : memref<1x4x8x8xf32, #tpu.memory_space<vmem>>, vector<1x1x8x8xf32>
    %61 = vector.shape_cast %60 : vector<1x1x8x8xf32> to vector<8x8xf32>
    %62 = vector.shape_cast %59 : vector<8x8xf32> to vector<1x1x8x8xf32>
    tpu.vector_store %arg8[%c0_47, %c2, %c0_48, %c0_49], %62 {strides = array<i32>} : memref<1x4x8x8xf32, #tpu.memory_space<vmem>>, vector<1x1x8x8xf32>,
    %63 = vector.extract_strided_slice %32 {offsets = [0, 16], sizes = [8, 8], strides = [1, 1]} : vector<8x32xf32> to vector<8x8xf32>
    %c0_50 = arith.constant 0 : index
    %c0_51 = arith.constant 0 : index
    %c2_52 = arith.constant 2 : index
    %c0_53 = arith.constant 0 : index
    %c0_54 = arith.constant 0 : index
    %64 = vector.load %arg9[%c0_50, %c0_51, %c2_52, %c0_53, %c0_54] : memref<2x1x4x8x8xf32, #tpu.memory_space<vmem>>, vector<1x1x1x8x8xf32>
    %65 = vector.shape_cast %64 : vector<1x1x1x8x8xf32> to vector<8x8xf32>
    %66 = vector.shape_cast %63 : vector<8x8xf32> to vector<1x1x1x8x8xf32>
    tpu.vector_store %arg9[%c0_50, %c0_51, %c2_52, %c0_53, %c0_54], %66 {strides = array<i32>} : memref<2x1x4x8x8xf32, #tpu.memory_space<vmem>>, vector<1x1x1x8x8xf32>,
    %67 = vector.extract_strided_slice %34 {offsets = [0, 16], sizes = [8, 8], strides = [1, 1]} : vector<8x32xf32> to vector<8x8xf32>
    %c1_55 = arith.constant 1 : index
    %c0_56 = arith.constant 0 : index
    %c2_57 = arith.constant 2 : index
    %c0_58 = arith.constant 0 : index
    %c0_59 = arith.constant 0 : index
    %68 = vector.load %arg9[%c1_55, %c0_56, %c2_57, %c0_58, %c0_59] : memref<2x1x4x8x8xf32, #tpu.memory_space<vmem>>, vector<1x1x1x8x8xf32>
    %69 = vector.shape_cast %68 : vector<1x1x1x8x8xf32> to vector<8x8xf32>
    %70 = vector.shape_cast %67 : vector<8x8xf32> to vector<1x1x1x8x8xf32>
    tpu.vector_store %arg9[%c1_55, %c0_56, %c2_57, %c0_58, %c0_59], %70 {strides = array<i32>} : memref<2x1x4x8x8xf32, #tpu.memory_space<vmem>>, vector<1x1x1x8x8xf32>,
    %71 = vector.extract_strided_slice %30 {offsets = [0, 24], sizes = [8, 8], strides = [1, 1]} : vector<8x32xf32> to vector<8x8xf32>
    %c0_60 = arith.constant 0 : index
    %c3 = arith.constant 3 : index
    %c0_61 = arith.constant 0 : index
    %c0_62 = arith.constant 0 : index
    %72 = vector.load %arg8[%c0_60, %c3, %c0_61, %c0_62] : memref<1x4x8x8xf32, #tpu.memory_space<vmem>>, vector<1x1x8x8xf32>
    %73 = vector.shape_cast %72 : vector<1x1x8x8xf32> to vector<8x8xf32>
    %74 = vector.shape_cast %71 : vector<8x8xf32> to vector<1x1x8x8xf32>
    tpu.vector_store %arg8[%c0_60, %c3, %c0_61, %c0_62], %74 {strides = array<i32>} : memref<1x4x8x8xf32, #tpu.memory_space<vmem>>, vector<1x1x8x8xf32>,
    %75 = vector.extract_strided_slice %32 {offsets = [0, 24], sizes = [8, 8], strides = [1, 1]} : vector<8x32xf32> to vector<8x8xf32>
    %c0_63 = arith.constant 0 : index
    %c0_64 = arith.constant 0 : index
    %c3_65 = arith.constant 3 : index
    %c0_66 = arith.constant 0 : index
    %c0_67 = arith.constant 0 : index
    %76 = vector.load %arg9[%c0_63, %c0_64, %c3_65, %c0_66, %c0_67] : memref<2x1x4x8x8xf32, #tpu.memory_space<vmem>>, vector<1x1x1x8x8xf32>
    %77 = vector.shape_cast %76 : vector<1x1x1x8x8xf32> to vector<8x8xf32>
    %78 = vector.shape_cast %75 : vector<8x8xf32> to vector<1x1x1x8x8xf32>
    tpu.vector_store %arg9[%c0_63, %c0_64, %c3_65, %c0_66, %c0_67], %78 {strides = array<i32>} : memref<2x1x4x8x8xf32, #tpu.memory_space<vmem>>, vector<1x1x1x8x8xf32>,
    %79 = vector.extract_strided_slice %34 {offsets = [0, 24], sizes = [8, 8], strides = [1, 1]} : vector<8x32xf32> to vector<8x8xf32>
    %c1_68 = arith.constant 1 : index
    %c0_69 = arith.constant 0 : index
    %c3_70 = arith.constant 3 : index
    %c0_71 = arith.constant 0 : index
    %c0_72 = arith.constant 0 : index
    %80 = vector.load %arg9[%c1_68, %c0_69, %c3_70, %c0_71, %c0_72] : memref<2x1x4x8x8xf32, #tpu.memory_space<vmem>>, vector<1x1x1x8x8xf32>
    %81 = vector.shape_cast %80 : vector<1x1x1x8x8xf32> to vector<8x8xf32>
    %82 = vector.shape_cast %79 : vector<8x8xf32> to vector<1x1x1x8x8xf32>
    tpu.vector_store %arg9[%c1_68, %c0_69, %c3_70, %c0_71, %c0_72], %82 {strides = array<i32>} : memref<2x1x4x8x8xf32, #tpu.memory_space<vmem>>, vector<1x1x1x8x8xf32>,
    return
  }
  func.func @transform_0(%arg0: i32, %arg1: i32) -> (i32, i32, i32) {
    %c0_i32 = arith.constant 0 : i32
    %c0_i32_0 = arith.constant 0 : i32
    return %arg0, %arg1, %c0_i32 : i32, i32, i32
  }
  func.func @transform_1(%arg0: i32, %arg1: i32) -> (i32, i32) {
    %c0_i32 = arith.constant 0 : i32
    %c0_i32_0 = arith.constant 0 : i32
    %c0_i32_1 = arith.constant 0 : i32
    return %c0_i32, %c0_i32_0 : i32, i32
  }
  func.func @transform_2(%arg0: i32, %arg1: i32) -> (i32, i32) {
    %c0_i32 = arith.constant 0 : i32
    %c0_i32_0 = arith.constant 0 : i32
    %c0_i32_1 = arith.constant 0 : i32
    return %c0_i32, %c0_i32_0 : i32, i32
  }
  func.func @transform_3(%arg0: i32, %arg1: i32) -> (i32, i32) {
    %c0_i32 = arith.constant 0 : i32
    %c0_i32_0 = arith.constant 0 : i32
    %c0_i32_1 = arith.constant 0 : i32
    return %c0_i32, %c0_i32_0 : i32, i32
  }
  func.func @transform_4(%arg0: i32, %arg1: i32) -> (i32, i32) {
    %c0_i32 = arith.constant 0 : i32
    %c0_i32_0 = arith.constant 0 : i32
    %c0_i32_1 = arith.constant 0 : i32
    return %c0_i32, %c0_i32_0 : i32, i32
  }
  func.func @transform_5(%arg0: i32, %arg1: i32) -> (i32, i32) {
    %c0_i32 = arith.constant 0 : i32
    %c0_i32_0 = arith.constant 0 : i32
    %c0_i32_1 = arith.constant 0 : i32
    return %c0_i32, %c0_i32_0 : i32, i32
  }
  func.func @transform_6(%arg0: i32, %arg1: i32) -> (i32, i32, i32, i32) {
    %c0_i32 = arith.constant 0 : i32
    %c0_i32_0 = arith.constant 0 : i32
    %c0_i32_1 = arith.constant 0 : i32
    return %arg0, %c0_i32, %arg1, %c0_i32_0 : i32, i32, i32, i32
  }
  func.func @transform_7(%arg0: i32, %arg1: i32) -> (i32, i32, i32, i32, i32) {
    %c0_i32 = arith.constant 0 : i32
    %c0_i32_0 = arith.constant 0 : i32
    %c0_i32_1 = arith.constant 0 : i32
    %c0_i32_2 = arith.constant 0 : i32
    return %c0_i32, %arg0, %c0_i32_0, %arg1, %c0_i32_1 : i32, i32, i32, i32, i32
  }
}

</mosaic_0001>

<bundles_post_ra>
// kernel: tpu_custom_call.1
= control target key start
LH: loop header
LB: loop body
LE: loop exit
PB: predicated region body
PF: predicated region fallthrough
CT: control target
= control target key end

     0   :  { %s1832_s0 = inlined_call_operand.hbm [shape: f32[2,8,32], index: 0, kind: input, shape index: {}]   ;;  %s1833_s1 = inlined_call_operand.hbm [shape: f32[1,32], index: 1, kind: input, shape index: {}]   ;;  %s1834_s2 = inlined_call_operand.hbm [shape: f32[1,32], index: 2, kind: input, shape index: {}]   ;;  %s1835_s3 = inlined_call_operand.hbm [shape: bf16[32,32], index: 3, kind: input, shape index: {}]   ;;  %s1836_s4 = inlined_call_operand.hbm [shape: bf16[32,32], index: 4, kind: input, shape index: {}]   ;;  %s1837_s5 = inlined_call_operand.hbm [shape: bf16[32,32], index: 5, kind: input, shape index: {}]   ;;  %s1838_s6 = inlined_call_operand.hbm [shape: f32[2,4,8,8], index: 6, kind: output, shape index: {0}]   ;;  %s1839_s7 = inlined_call_operand.hbm [shape: f32[2,2,4,8,8], index: 7, kind: output, shape index: {1}]  }
   0x1   :  { %1849 = sst [smem:[#allocation24_spill]] %s1833_s1 }
   0x2   :  { %1850 = sst [smem:[#allocation25_spill]] %s1834_s2 }
   0x3   :  { %13 = vsyncpa [#allocation3], 0 }
   0x4   :  { %15 = vsyncpa [#allocation3 + $0x1], 0 }
   0x5   :  { %16 = vsyncpa [#allocation6], 0 }
   0x6   :  { %17 = vsyncpa [#allocation9], 0 }
   0x7   :  { %18 = vsyncpa [#allocation12], 0 }
   0x8   :  { %19 = vsyncpa [#allocation4], 0 }
   0x9   :  { %21 = vsyncpa [#allocation4 + $0x1], 0 }
   0xa   :  { %22 = vsyncpa [#allocation15], 0 }
   0xb   :  { %24 = vsyncpa [#allocation15 + $0x1], 0  ;;  %s1449_s24 = smov 0   ;;  %s1451_s25 = smov 0  }
   0xc   :  { %s1453_s26 = smov 0   ;;  %s1455_s27 = smov 0  }
   0xd   :  { %s1457_s28 = smov 0   ;;  %s1459_s29 = smov 0  }
   0xe LB: > { %s1843_s30 = sadd.s32 4294967295, %s1384_s29   ;;  %p886_p0 = scmp.ge.s32.totalorder %s1384_s29, 1  ;;  %s1384_s29 = sphi %s1459_s29, %s30_s29   ;;  %s1380_s28 = sphi %s1457_s28, %s1875_s28   ;;  %s1376_s27 = sphi %s1455_s27, %s1874_s27   ;;  %s1372_s26 = sphi %s1453_s26, %s1873_s26   ;;  %s1368_s25 = sphi %s1451_s25, %s1872_s25   ;;  %s1364_s24 = sphi %s1449_s24, %s1871_s24  }
   0xf   : > { %p1483_p1 = scmp.eq.s32.totalorder %s1843_s30, 0  ;;  %p236_p2 = scmp.lt.s32.totalorder %s1384_s29, 3 }
  0x10   : > { %s1386_s10 = smov [#allocation5]   ;;  %s1387_s12 = smov [#allocation8]  }
  0x11   : > { %s1851_s8 = scalar_select %p1483_p1, 1, 0 }
  0x12   : > { %p1488_p3 = pnand %p886_p0, %p236_p2  ;;  %s249_s11 = sshll.u32 %s1386_s10, 4  ;;  %s250_s11 = int_to_ptr.vmem [resolvable:$true] %s249_s11 }
  0x13   : > { %s270_s13 = sshll.u32 %s1387_s12, 4  ;;  %s1388_s15 = smov [#allocation7]   ;;  %s1501_s13 = int_to_ptr.vmem [resolvable:$true] %s270_s13 }
  0x14   : > { %s1852_s9 = scalar_select %p1488_p3, 1, 0 }
  0x15   : > { %p1000_p5 = pneg %p1488_p3  ;;  %s1503_s16 = sshll.u32 %s1388_s15, 4  ;;  %s261_s16 = int_to_ptr.vmem [resolvable:$true] %s1503_s16 }
  0x16   : > { %s1854_s1 = sld [smem:[#allocation24_spill]] }
  0x17   : > { %p1497_p6 = pnand %p1000_p5, %p1483_p1 }
  0x19   : > { %p1513_p8 = pneg %p1497_p6 }
  0x1c   : > { %s1116_s19 = scalar_lea.hbm %s1854_s1, 16 }
  0x1d   : > { %p1117_p7 = scmp.ne.s32.totalorder %s1854_s1, %s1116_s19  ;;  %p1123_p11 = scmp.lt.u32.totalorder %s1116_s19, %s1854_s1 }
  0x1f   : > { %p1119_p9 = pnand %p1513_p8, %p1117_p7 }
  0x21   : > { %p1120_p10 = pneg %p1119_p9 }
  0x23   : > { %p1125_p12 = pnand %p1123_p11, %p1120_p10 }
  0x25   : > { %1128 = shalt.err (!%p1125_p12)
}
  0x26   : > { %s1129_s12 = scalar_lea.vmem %s250_s11, 16  ;;  %s1136_s15 = scalar_lea.vmem %s250_s11, 32 }
  0x27   : > { %p1130_p13 = scmp.ne.s32.totalorder %s250_s11, %s1129_s12  ;;  %p1137_p5 = scmp.lt.s32.totalorder %s250_s11, %s250_s11 }
  0x28   : > { %p1138_p4 = scmp.lt.s32.totalorder %s1136_s15, %s1129_s12 }
  0x29   : > { %p1132_p0 = pnand %p1130_p13, %p1513_p8 }
  0x2a   : > { %p1139_p3 = por %p1138_p4, %p1137_p5 }
  0x2b   : > { %p1133_p2 = pneg %p1132_p0 }
  0x2d   : > { %p1140_p1 = pnand %p1139_p3, %p1133_p2 }
  0x2f   : > { %1143 = shalt.err (!%p1140_p1)
}
  0x30   : > { %1003 = dma.hbm_to_vmem [thread:$0]  (!%p1497_p6), %s1854_s1, 16, %s250_s11, [#allocation6]  }
  0x31   : > { %s1144_s21 = scalar_lea.hbm %s1835_s3, 256 }
  0x32   : > { %p1145_p7 = scmp.ne.s32.totalorder %s1835_s3, %s1144_s21  ;;  %p1151_p1 = scmp.lt.u32.totalorder %s1144_s21, %s1835_s3 }
  0x34   : > { %p1147_p9 = pnand %p1145_p7, %p1513_p8 }
  0x36   : > { %p1148_p4 = pneg %p1147_p9 }
  0x38   : > { %p1153_p3 = pnand %p1151_p1, %p1148_p4 }
  0x3a   : > { %1156 = shalt.err (!%p1153_p3)
}
  0x3b   : > { %s1157_s11 = scalar_lea.vmem %s1501_s13, 256  ;;  %p1165_p13 = scmp.lt.s32.totalorder %s1501_s13, %s1501_s13 }
  0x3c   : > { %p1158_p10 = scmp.ne.s32.totalorder %s1501_s13, %s1157_s11  ;;  %p1166_p0 = scmp.lt.s32.totalorder %s1157_s11, %s1157_s11 }
  0x3e   : > { %p1160_p11 = pnand %p1158_p10, %p1513_p8  ;;  %p1167_p2 = por %p1166_p0, %p1165_p13 }
  0x40   : > { %p1161_p12 = pneg %p1160_p11 }
  0x42   : > { %p1168_p5 = pnand %p1167_p2, %p1161_p12 }
  0x44   : > { %1171 = shalt.err (!%p1168_p5)
}
  0x45   : > { %s1844_s17 = smov 64   ;;  %s1846_s18 = smov 4  }
  0x46   : > { %1009 = dma.hbm_to_vmem [thread:$0]  (!%p1497_p6), %s1835_s3, 256, %s1501_s13, [#allocation9], %s1844_s17, %s1844_s17, %s1846_s18  }
  0x47   : > { %s1856_s2 = sld [smem:[#allocation25_spill]] }
  0x4d   : > { %s1172_s10 = scalar_lea.hbm %s1856_s2, 16 }
  0x4e   : > { %p1173_p7 = scmp.ne.s32.totalorder %s1856_s2, %s1172_s10  ;;  %p1179_p1 = scmp.lt.u32.totalorder %s1172_s10, %s1856_s2 }
  0x50   : > { %p1175_p9 = pnand %p1173_p7, %p1513_p8 }
  0x52   : > { %p1176_p4 = pneg %p1175_p9 }
  0x54   : > { %p1181_p3 = pnand %p1179_p1, %p1176_p4 }
  0x56   : > { %1184 = shalt.err (!%p1181_p3)
}
  0x57   : > { %s1185_s19 = scalar_lea.vmem %s261_s16, 16  ;;  %s1192_s13 = scalar_lea.vmem %s261_s16, 32 }
  0x58   : > { %p1186_p10 = scmp.ne.s32.totalorder %s261_s16, %s1185_s19  ;;  %p1193_p13 = scmp.lt.s32.totalorder %s261_s16, %s261_s16 }
  0x59   : > { %p1194_p0 = scmp.lt.s32.totalorder %s1192_s13, %s1185_s19 }
  0x5a   : > { %p1188_p11 = pnand %p1186_p10, %p1513_p8 }
  0x5b   : > { %p1195_p2 = por %p1194_p0, %p1193_p13 }
  0x5c   : > { %p1189_p12 = pneg %p1188_p11 }
  0x5e   : > { %p1196_p5 = pnand %p1195_p2, %p1189_p12 }
  0x60   : > { %1199 = shalt.err (!%p1196_p5)
}
  0x61   : > { %1006 = dma.hbm_to_vmem [thread:$0]  (!%p1497_p6), %s1856_s2, 16, %s261_s16, [#allocation6]  }
  0x62   : > { %s1391_s30 = smov [#allocation10]   ;;  %s1392_s10 = smov [#allocation11]  }
  0x63   : > { %s283_s23 = sshll.u32 %s1391_s30, 4  ;;  %s296_s12 = sshll.u32 %s1392_s10, 4  ;;  %s284_s23 = int_to_ptr.vmem [resolvable:$true] %s283_s23  ;;  %s297_s12 = int_to_ptr.vmem [resolvable:$true] %s296_s12 }
  0x64   : > { %s1200_s17 = scalar_lea.hbm %s1836_s4, 256 }
  0x65   : > { %p1201_p7 = scmp.ne.s32.totalorder %s1836_s4, %s1200_s17  ;;  %p1207_p1 = scmp.lt.u32.totalorder %s1200_s17, %s1836_s4 }
  0x67   : > { %p1203_p9 = pnand %p1201_p7, %p1513_p8 }
  0x69   : > { %p1204_p4 = pneg %p1203_p9 }
  0x6b   : > { %p1209_p3 = pnand %p1207_p1, %p1204_p4 }
  0x6d   : > { %1212 = shalt.err (!%p1209_p3)
}
  0x6e   : > { %s1213_s16 = scalar_lea.vmem %s284_s23, 256  ;;  %p1221_p13 = scmp.lt.s32.totalorder %s284_s23, %s284_s23 }
  0x6f   : > { %p1214_p10 = scmp.ne.s32.totalorder %s284_s23, %s1213_s16  ;;  %p1222_p0 = scmp.lt.s32.totalorder %s1213_s16, %s1213_s16 }
  0x71   : > { %p1216_p11 = pnand %p1214_p10, %p1513_p8  ;;  %p1223_p2 = por %p1222_p0, %p1221_p13 }
  0x73   : > { %p1217_p12 = pneg %p1216_p11 }
  0x75   : > { %p1224_p5 = pnand %p1223_p2, %p1217_p12 }
  0x77   : > { %1227 = shalt.err (!%p1224_p5)
}
  0x78   : > { %s1857_s21 = smov 4   ;;  %s1858_s30 = smov 64  }
  0x79   : > { %1012 = dma.hbm_to_vmem [thread:$0]  (!%p1497_p6), %s1836_s4, 256, %s284_s23, [#allocation9], %s1858_s30, %s1858_s30, %s1857_s21  }
  0x7a   : > { %s1228_s11 = scalar_lea.hbm %s1837_s5, 256 }
  0x7b   : > { %p1229_p7 = scmp.ne.s32.totalorder %s1837_s5, %s1228_s11  ;;  %p1235_p1 = scmp.lt.u32.totalorder %s1228_s11, %s1837_s5 }
  0x7d   : > { %p1231_p9 = pnand %p1229_p7, %p1513_p8 }
  0x7f   : > { %p1232_p4 = pneg %p1231_p9 }
  0x81   : > { %p1237_p3 = pnand %p1235_p1, %p1232_p4 }
  0x83   : > { %1240 = shalt.err (!%p1237_p3)
}
  0x84   : > { %s1241_s18 = scalar_lea.vmem %s297_s12, 256  ;;  %p1249_p13 = scmp.lt.s32.totalorder %s297_s12, %s297_s12 }
  0x85   : > { %p1242_p10 = scmp.ne.s32.totalorder %s297_s12, %s1241_s18  ;;  %p1250_p0 = scmp.lt.s32.totalorder %s1241_s18, %s1241_s18 }
  0x87   : > { %p1244_p11 = pnand %p1242_p10, %p1513_p8  ;;  %p1251_p2 = por %p1250_p0, %p1249_p13 }
  0x89   : > { %p1245_p12 = pneg %p1244_p11 }
  0x8b   : > { %p1252_p5 = pnand %p1251_p2, %p1245_p12 }
  0x8d   : > { %1255 = shalt.err (!%p1252_p5)
}
  0x8e   : > { %1015 = dma.hbm_to_vmem [thread:$0]  (!%p1497_p6), %s1837_s5, 256, %s297_s12, [#allocation12], %s1858_s30, %s1858_s30, %s1857_s21  }
  0x8f   : > { %s885_s14 = sadd.s32 4294967294, %s1384_s29   ;;  %s42_s22 = sadd.s32 1, %s1380_s28 }
  0x90   : > { %s51_s10 = sadd.s32 1, %s1372_s26  ;;  %p44_p8 = scmp.ge.s32.totalorder %s42_s22, 2 }
  0x91   : > { %p58_p7 = scmp.ne.s32.totalorder %s1372_s26, %s1368_s25  ;;  %p59_p9 = scmp.eq.s32.totalorder %s1384_s29, 0 }
  0x92   : > { %p64_p4 = scmp.ne.s32.totalorder %s1368_s25, %s1364_s24  ;;  %s1877_s22 = smov (%p44_p8, %s42_s22), 0 }
  0x93   : > { %p1626_p1 = por %p59_p9, %p58_p7  ;;  %p1860_p3 = scmp.ne.s32.totalorder %s1851_s8, 0 }
  0x94   : > { %s46_s21 = ssub.s32 %s1380_s28, %s1877_s22  ;;  %s1862_s30 = sadd.s32 4294967295, %s1384_s29  }
  0x95   : > { %p1632_p6 = por %p1860_p3, %p64_p4  ;;  %p195_p10 = scmp.eq.s32.totalorder %s1862_s30, 1 }
  0x96   : > { %p49_p11 = scmp.eq.s32.totalorder %s46_s21, 0  ;;  %p201_p12 = scmp.eq.s32.totalorder %s885_s14, 1 }
  0x97   : > { %p1640_p13 = por %p195_p10, %p58_p7  ;;  %p1032_p0 = scmp.lt.s32.totalorder %s1384_s29, 2 }
  0x98   : > { %s1646_s19 = scalar_select %p49_p11, %s1372_s26, %s51_s10  }
  0x99   : > { %s1863_s11 = scalar_select %p1640_p13, 1, 0 }
  0x9a   : > { %p1648_p2 = por %p201_p12, %p64_p4  ;;  %s310_s20 = sand.u32 1, %s1372_s26  }
  0x9b   : > { %s893_s16 = sshll.u32 %s310_s20, 3  ;;  %s894_s18 = sshll.u32 %s1380_s28, 7 }
  0x9c   : > { %s1864_s13 = scalar_select %p1648_p2, 1, 0 }
  0x9d   : > { %s1657_s30 = scalar_lea.hbm %s1832_s0, %s894_s18  ;;  %s314_s14 = scalar_lea.vmem [#allocation2], %s893_s16 }
  0x9e   : > { %s322_s21 = sshll.u32 %s314_s14, 4  ;;  %p1663_p5 = pnand %p1032_p0, %p1626_p1  ;;  %s1659_s21 = int_to_ptr.vmem [resolvable:$true] %s322_s21 }
  0x9f   : > { %s311_s1 = scalar_lea.sflag [#allocation3], %s310_s20  ;;  %s1256_s2 = scalar_lea.hbm %s1657_s30, 128 }
  0xa0   : > { %p1257_p8 = scmp.ne.s32.totalorder %s1657_s30, %s1256_s2  ;;  %p1258_p7 = pneg %p1663_p5 }
  0xa1   : > { %s1261_s23 = scalar_lea.hbm %s1832_s0, 256  ;;  %p1262_p1 = scmp.lt.u32.totalorder %s1657_s30, %s1832_s0 }
  0xa2   : > { %p1259_p9 = pnand %p1258_p7, %p1257_p8  ;;  %p1263_p3 = scmp.lt.u32.totalorder %s1261_s23, %s1256_s2 }
  0xa3   : > { %p1265_p11 = scmp.lt.u32.totalorder %s1256_s2, %s1657_s30 }
  0xa4   : > { %p1260_p4 = pneg %p1259_p9  ;;  %p1264_p10 = por %p1263_p3, %p1262_p1 }
  0xa6   : > { %p1266_p12 = por %p1265_p11, %p1264_p10 }
  0xa8   : > { %p1267_p0 = pnand %p1266_p12, %p1260_p4 }
  0xaa   : > { %1270 = shalt.err (!%p1267_p0)
}
  0xab   : > { %s1271_s20 = scalar_lea.vmem %s1659_s21, 128  ;;  %s1393_s14 = smov [#allocation2]  }
  0xac   : > { %p1272_p8 = scmp.ne.s32.totalorder %s1659_s21, %s1271_s20  ;;  %s1276_s16 = sshll.u32 %s1393_s14, 4  ;;  %s1277_s16 = int_to_ptr.vmem [resolvable:$false] %s1276_s16 }
  0xad   : > { %s1278_s18 = scalar_lea.vmem %s1277_s16, 256  ;;  %p1279_p13 = scmp.lt.s32.totalorder %s1659_s21, %s1277_s16 }
  0xae   : > { %p1274_p9 = pnand %p1272_p8, %p1258_p7  ;;  %p1280_p1 = scmp.lt.s32.totalorder %s1278_s18, %s1271_s20 }
  0xb0   : > { %p1275_p2 = pneg %p1274_p9  ;;  %p1281_p3 = por %p1280_p1, %p1279_p13 }
  0xb2   : > { %p1282_p10 = pnand %p1281_p3, %p1275_p2 }
  0xb4   : > { %1285 = shalt.err (!%p1282_p10)
}
  0xb5   : > { %1019 = dma.hbm_to_vmem [thread:$0]  (!%p1663_p5), %s1657_s30, 128, %s1659_s21, %s311_s1  }
  0xb6   : > { %p1866_p4 = scmp.ne.s32.totalorder %s1852_s9, 0 }
  0xb7   : > { %s1695_s2 = sand.u32 (!%p1866_p4), 1, %s1368_s25  }
  0xb8   : > { %331 = sbr.rel (%p1866_p4) target bundleno = 892 (0x37c), region = 44  ;;  %s896_s23 = sshll.u32 (!%p1866_p4), %s1695_s2, 3 }
  0xb9   : > { %s334_s15 = scalar_lea.sflag (!%p1866_p4), [#allocation3], %s1695_s2  ;;  %s337_s17 = scalar_lea.vmem (!%p1866_p4), [#allocation2], %s896_s23 }
  0xbf   : > { %1339 = dma.done.wait (%p1632_p6), %s334_s15, 128  }
  0xc0   : > { %1341 = vsyncadd (%p1632_p6), %s334_s15, 4294967168  ;;  %p1867_p13 = scmp.ne.s32.totalorder %s1851_s8, 0 }
  0xc2   : > { %1343 = dma.done.wait (%p1867_p13), [#allocation6], 32  }
  0xc3   : > { %1345 = vsyncadd (%p1867_p13), [#allocation6], 4294967264 }
  0xc4   : > { %1347 = dma.done.wait (%p1867_p13), [#allocation9], 512  }
  0xc5   : > { %1349 = vsyncadd (%p1867_p13), [#allocation9], 4294966784 }
  0xc6   : > { %1351 = dma.done.wait (%p1867_p13), [#allocation12], 256  }
  0xc7   : > { %1353 = vsyncadd (%p1867_p13), [#allocation12], 4294967040  ;;  %vm397_vm0 = vcmask 261120   ;;  %v394_v0 = vld [vmem:[%s337_s17] sm:$0xff]  ;;  %v1108_v7 = vld [vmem:[#allocation8] sm:$0xff]   ;;  %v1394_v9 = vmov 0.0  }
  0xc8   : > { %v398_v1 = vsel %vm397_vm0, %v394_v0, 0.0  ;;  %v1109_v8 = vld [vmem:[#allocation10] sm:$0xff]   ;;  %944 = vmatprep.subr.bf16.mxu0 %v1394_v9  ;;  %952 = vmatprep.subr.bf16.mxu1 %v1394_v9  ;;  %v1110_v10 = vld [vmem:[#allocation8 + $0x8] sm:$0xff]   ;;  %v1111_v11 = vld [vmem:[#allocation10 + $0x8] sm:$0xff]   ;;  %vm1395_vm1 = vmmov 0   ;;  %s903_s1 = sshll.u32 %s1695_s2, 6 }
  0xc9   : > { %399 = vadd.xlane.f32.xlu0 %v398_v1  ;;  %945 = vmatpush3.bf16.msra.mxu0 %v1108_v7  ;;  %v904_v16 = vld [vmem:[#allocation5] ss:$0 sm:$0xff]  ;;  %v905_v18 = vld [vmem:[#allocation7] ss:$0 sm:$0xff]  ;;  %v1112_v21 = vld [vmem:[#allocation11] sm:$0xff]   ;;  %s902_s8 = sshll.u32 %s1695_s2, 5 }
  0xca   : > { %953 = vmatpush3.bf16.msra.mxu1 %v1109_v8  ;;  %946 = vmatprep.subr.bf16.mxu0 %v1394_v9  ;;  %v1113_v23 = vld [vmem:[#allocation11 + $0x8] sm:$0xff]   ;;  %vm599_vm2 = vcmask 64512   ;;  %s1725_s9 = scalar_lea.vmem [#allocation14], %s903_s1  ;;  %s1729_s12 = scalar_lea.vmem [#allocation13], %s902_s8 }
  0xcb   : > { %954 = vmatprep.subr.bf16.mxu1 %v1394_v9  ;;  %948 = vmatprep.mubr.msk.bf16.mxu0 %vm1395_vm1, %v1394_v9  ;;  %s1396_s30 = smov 104   ;;  %s1397_s21 = smov 120  }
  0xcc   : > { %956 = vmatprep.mubr.msk.bf16.mxu1 %vm1395_vm1, %v1394_v9  ;;  %s1398_s10 = smov 112   ;;  %s672_s20 = sshll.u32 %s1729_s12, 4  ;;  %s1737_s20 = int_to_ptr.vmem [resolvable:$true] %s672_s20 }
  0xcd   : > { %947 = vmatpush3.bf16.msra.mxu0 %v1110_v10  ;;  %s933_s14 = sshll.u32 %s1376_s27, 9  ;;  %s653_s15 = scalar_lea.sflag [#allocation4], %s1695_s2 }
  0xce   : > { %955 = vmatpush3.bf16.msra.mxu1 %v1111_v11  ;;  %960 = vmatprep.subr.bf16.mxu0 %v1394_v9  ;;  %s1748_s23 = scalar_lea.hbm %s1838_s6, %s933_s14  ;;  %s1286_s17 = scalar_lea.vmem %s1737_s20, 512 }
  0xcf   : > { %p1287_p6 = scmp.ne.s32.totalorder %s1737_s20, %s1286_s17  ;;  %p1868_p2 = scmp.ne.s32.totalorder %s1863_s11, 0 }
  0xd0   : > { %s1399_s1 = smov [#allocation13]  }
  0xd1   : > { %p1288_p5 = pnand %p1287_p6, %p1868_p2  ;;  %s1290_s8 = sshll.u32 %s1399_s1, 4  ;;  %s1291_s8 = int_to_ptr.vmem [resolvable:$false] %s1290_s8 }
  0xd2   : > { %p1293_p11 = scmp.lt.s32.totalorder %s1737_s20, %s1291_s8 }
  0xd3   : > { %p1289_p7 = pneg %p1288_p5 }
 0x156   : > { %v400_v2 = vpop.xlane.xlu0 %399 }
 0x157   : > { %v402_v3 = vmul.f32 0.03125, %v400_v2 }
 0x159   : > { %v403_v4 = vsub.f32 %v394_v0, %v402_v3 }
 0x15b   : > { %v404_v5 = vmul.f32 %v403_v4, %v403_v4 }
 0x15d   : > { %v405_v6 = vsel %vm397_vm0, %v404_v5, 0.0 }
 0x15e   : > { %406 = vadd.xlane.f32.xlu0 %v405_v6 }
 0x1eb   : > { %v407_v12 = vpop.xlane.xlu0 %406 }
 0x1ec   : > { %v408_v13 = vmul.f32 0.03125, %v407_v12 }
 0x1ee   : > { %v409_v14 = vadd.f32 1e-05, %v408_v13 }
 0x1f0   : > { %1114 = vrsqrt.f32 %v409_v14 }
 0x1fa   : > { %v1115_v15 = vpop.eup %1114 }
 0x1fb   : > { %v411_v17 = vmul.f32 %v1115_v15, %v403_v4 }
 0x1fd   : > { %v418_v19 = vmul.f32 %v904_v16, %v411_v17 }
 0x1ff   : > { %v425_v20 = vadd.f32 %v905_v18, %v418_v19 }
 0x201   : > { %v426_v22 = vpack.c.bf16 %v425_v20, %v425_v20 }
 0x203   : > { %949 = vmatmul.mubr.msk.bf16.vlgmr.msra.gmra.mrb[0].mxu0 %vm397_vm0, %v426_v22  ;;  %957 = vmatmul.mubr.msk.bf16.vlgmr.msra.gmra.mrb[0].mxu1 %vm397_vm0, %v426_v22 }
 0x204   : > { %961 = vmatpush3.bf16.msra.mxu0 %v1112_v21  ;;  %964 = vmatprep.mubr.msk.bf16.mxu0 %vm1395_vm1, %v1394_v9 }
 0x205   : > { %962 = vmatprep.subr.bf16.mxu0 %v1394_v9 }
 0x208   : > { %963 = vmatpush3.bf16.msra.mxu0 %v1113_v23 }
 0x20b   : > { %965 = vmatmul.mubr.msk.bf16.vlgmr.msra.gmra.mrb[4].mxu0 %vm397_vm0, %v426_v22 }
 0x2d6   : > { %v480_v24 = vpop.f32.mrb[0].mxu0  ;;  %v537_v25 = vpop.f32.mrb[0].mxu1 }
 0x2d7   : > { %v486_v26 = vmul.f32 0.35355338, %v480_v24  ;;  %601 = vst.msk [vmem:[%s1725_s9] sm:$0xff] %vm599_vm2, %v537_v25  ;;  %v950_v27 = vpop.f32.mrb[1].mxu0  ;;  %v958_v28 = vpop.f32.mrb[1].mxu1 }
 0x2d8   : > { %v483_v29 = vpop.f32.mrb[2].mxu0  ;;  %v540_v30 = vpop.f32.mrb[2].mxu1 }
 0x2d9   : > { %600 = vst.msk [vmem:[%s1729_s12] sm:$0xff] %vm599_vm2, %v486_v26  ;;  %v959_v31 = vpop.f32.mrb[3].mxu1  ;;  %637 = vrot.lane.b32.xlu0 %v486_v26, %s1396_s30  ;;  %605 = vrot.lane.b32.xlu1 %v486_v26, %s1397_s21  ;;  %v951_v32 = vpop.f32.mrb[3].mxu0 }
 0x2dd   : > { %622 = vrot.lane.b32.xlu1 %v486_v26, %s1398_s10 }
 0x2de   : > { %v593_v33 = vpop.f32.mrb[4].mxu0 }
 0x2df   : > { %915 = vst.msk [vmem:[%s1725_s9 + $0x20] sm:$0xff] %vm599_vm2, %v593_v33  ;;  %v966_v34 = vpop.f32.mrb[5].mxu0 }
 0x2e0   : > { %v596_v35 = vpop.f32.mrb[6].mxu0 }
 0x2e1   : > { %611 = vrot.lane.b32.xlu1 %v537_v25, %s1397_s21  ;;  %v967_v36 = vpop.f32.mrb[7].mxu0 }
 0x2e5   : > { %627 = vrot.lane.b32.xlu1 %v537_v25, %s1398_s10 }
 0x2e9   : > { %642 = vrot.lane.b32.xlu1 %v537_v25, %s1396_s30 }
 0x2ed   : > { %617 = vrot.lane.b32.xlu1 %v593_v33, %s1397_s21 }
 0x2f1   : > { %632 = vrot.lane.b32.xlu1 %v593_v33, %s1398_s10 }
 0x2f5   : > { %647 = vrot.lane.b32.xlu1 %v593_v33, %s1396_s30  ;;  %s1292_s30 = scalar_lea.vmem %s1291_s8, 1024 }
 0x2f6   : > { %p1294_p12 = scmp.lt.s32.totalorder %s1292_s30, %s1286_s17 }
 0x2f8   : > { %p1295_p0 = por %p1294_p12, %p1293_p11 }
 0x2fa   : > { %p1296_p8 = pnand %p1295_p0, %p1289_p7 }
 0x34b   : > { %v638_v37 = vpop.permute.xlu0 %637  ;;  %v606_v38 = vpop.permute.xlu1 %605 }
 0x34c   : > { %922 = vst.msk [vmem:[%s1729_s12 + $0x18] sm:$0xff] %vm599_vm2, %v638_v37  ;;  %916 = vst.msk [vmem:[%s1729_s12 + $0x8] sm:$0xff] %vm599_vm2, %v606_v38 }
 0x34f   : > { %v623_v39 = vpop.permute.xlu1 %622 }
 0x350   : > { %919 = vst.msk [vmem:[%s1729_s12 + $0x10] sm:$0xff] %vm599_vm2, %v623_v39 }
 0x351   : > { %1299 = shalt.err (!%p1296_p8)
}
 0x352   : > { %s1300_s12 = scalar_lea.hbm %s1748_s23, 512  ;;  %s1304_s16 = scalar_lea.hbm %s1838_s6, 1024 }
 0x353   : > { %p1301_p9 = scmp.ne.s32.totalorder %s1748_s23, %s1300_s12  ;;  %p1305_p10 = scmp.lt.u32.totalorder %s1748_s23, %s1838_s6 }
 0x354   : > { %p1306_p4 = scmp.lt.u32.totalorder %s1304_s16, %s1300_s12  ;;  %p1308_p6 = scmp.lt.u32.totalorder %s1300_s12, %s1748_s23 }
 0x355   : > { %p1302_p1 = pnand %p1301_p9, %p1868_p2 }
 0x356   : > { %p1307_p13 = por %p1306_p4, %p1305_p10 }
 0x357   : > { %p1303_p3 = pneg %p1302_p1 }
 0x358   : > { %p1309_p5 = por %p1308_p6, %p1307_p13 }
 0x35a   : > { %p1310_p7 = pnand %p1309_p5, %p1303_p3 }
 0x35c   : > { %1313 = shalt.err (!%p1310_p7)
}
 0x35d   : > { %s1400_s17 = smov 128   ;;  %s1401_s8 = smov 8   ;;  %v612_v40 = vpop.permute.xlu1 %611 }
 0x35e   : > { %990 = dma.vmem_to_hbm [thread:$0]  (%p1868_p2), %s1737_s20, 512, %s1748_s23, %s653_s15, %s1400_s17, %s1400_s17, %s1401_s8  }
 0x35f   : > { %917 = vst.msk [vmem:[%s1725_s9 + $0x8] sm:$0xff] %vm599_vm2, %v612_v40  ;;  %s658_s30 = scalar_lea.sflag [#allocation15], %s1695_s2 }
 0x361   : > { %v628_v41 = vpop.permute.xlu1 %627 }
 0x362   : > { %920 = vst.msk [vmem:[%s1725_s9 + $0x10] sm:$0xff] %vm599_vm2, %v628_v41 }
 0x365   : > { %v643_v42 = vpop.permute.xlu1 %642 }
 0x366   : > { %923 = vst.msk [vmem:[%s1725_s9 + $0x18] sm:$0xff] %vm599_vm2, %v643_v42 }
 0x369   : > { %v618_v43 = vpop.permute.xlu1 %617 }
 0x36a   : > { %918 = vst.msk [vmem:[%s1725_s9 + $0x28] sm:$0xff] %vm599_vm2, %v618_v43 }
 0x36d   : > { %v633_v44 = vpop.permute.xlu1 %632 }
 0x36e   : > { %921 = vst.msk [vmem:[%s1725_s9 + $0x30] sm:$0xff] %vm599_vm2, %v633_v44 }
 0x371   : > { %v648_v45 = vpop.permute.xlu1 %647 }
 0x372   : > { %924 = vst.msk [vmem:[%s1725_s9 + $0x38] sm:$0xff] %vm599_vm2, %v648_v45 }
 0x373   : > { %s688_s15 = scalar_lea.hbm %s1839_s7, %s933_s14  ;;  %s705_s12 = sshll.u32 %s1725_s9, 4  ;;  %s706_s12 = int_to_ptr.vmem [resolvable:$true] %s705_s12 }
 0x374   : > { %s1402_s21 = smov 512   ;;  %s1403_s2 = smov 1024  }
 0x375   : > { %991 = sst [smem:[#allocation17]] (%p1868_p2), %s1402_s21  ;;  %s1404_s27 = smov 4  }
 0x376   : > { %992 = sst [smem:[#allocation17 + $0x1]] (%p1868_p2), %s1403_s2  ;;  %s1405_s10 = smov 128  }
 0x377   : > { %993 = sst [smem:[#allocation17 + $0x2]] (%p1868_p2), %s1404_s27  ;;  %s1406_s16 = smov 8  }
 0x378   : > { %994 = sst [smem:[#allocation17 + $0x3]] (%p1868_p2), %s1405_s10  ;;  %s1407_s14 = smov [#allocation16]  }
 0x379   : > { %995 = sst [smem:[#allocation17 + $0x4]] (%p1868_p2), %s1405_s10  ;;  %s1408_s9 = smov 0  }
 0x37a   : > { %996 = sst [smem:[#allocation17 + $0x5]] (%p1868_p2), %s1406_s16 }
 0x37b   : > { %997 = dma.general (%p1868_p2), %s706_s12, 1024, %s688_s15, %s658_s30, %s1407_s14, [#allocation17], %s1408_s9, 0  }
 0x37c PF: > { %s733_s18 = sand.u32 1, %s1364_s24   ;;  %p1869_p11 = scmp.ne.s32.totalorder %s1864_s13, 0 }
 0x37d   : > { %p1870_p12 = scmp.ge.s32.totalorder %s1384_s29, 2  ;;  %s734_s1 = scalar_lea.sflag [#allocation4], %s733_s18 }
 0x37f   : > { %p1021_p0 = pnand %p1870_p12, %p1869_p11 }
 0x381   : > { %1355 = dma.done.wait (!%p1021_p0), %s734_s1, 512  }
 0x382   : > { %1357 = vsyncadd (!%p1021_p0), %s734_s1, 4294966784  ;;  %s743_s17 = scalar_lea.sflag [#allocation15], %s733_s18 }
 0x383   : > { %1359 = dma.done.wait (!%p1021_p0), %s743_s17, 1024  }
 0x384   : > { %1361 = vsyncadd (!%p1021_p0), %s743_s17, 4294966272  ;;  %s30_s29 = sadd.s32 1, %s1384_s29   ;;  %s1871_s24 = smov %s1368_s25 }
 0x385   : > { %p27_p8 = scmp.ge.s32.totalorder %s30_s29, 4   ;;  %s1872_s25 = smov %s1372_s26 }
 0x386   : > { %s1873_s26 = smov %s1646_s19  ;;  %s1874_s27 = smov %s1380_s28 }
 0x387   : > { %s1875_s28 = smov %s1877_s22  ;;  %29 = sbr.rel (!%p27_p8) target bundleno = 14 (0xe), region = 141 }
 0x38e   :  { %748 = vsyncpa [#allocation3], 1 }
 0x38f   :  { %750 = vsyncpa [#allocation3 + $0x1], 1 }
 0x390   :  { %751 = vsyncpa [#allocation6], 1 }
 0x391   :  { %752 = vsyncpa [#allocation9], 1 }
 0x392   :  { %753 = vsyncpa [#allocation12], 1 }
 0x393   :  { %754 = vsyncpa [#allocation4], 1 }
 0x394   :  { %756 = vsyncpa [#allocation4 + $0x1], 1 }
 0x395   :  { %757 = vsyncpa [#allocation15], 1 }
 0x396   :  { %759 = vsyncpa [#allocation15 + $0x1], 1 }

</bundles_post_ra>
